<compile_context>
chip_gen: v5e
topology: v5e:2x2
jax: 0.10.0
libtpu: 0.0.40
codegen_flags: <defaults>
</compile_context>

<pallas_src>
import math

import jax
import jax.numpy as jnp
from jax.experimental import pallas as pl
from jax.experimental.pallas import tpu as pltpu


# --------------------------------- fused kernel ------------------------------------

def make_fused_kernel(B, S, vip_level):
    L = int(math.log2(S))

    def fused_kernel(x_ref, wih_ref, whh_ref, bi_ref, bhn_ref,
                     scale_ref, shift_ref, vipw_ref, vipb_ref,
                     out_ref, eo_ref):
        H = whh_ref.shape[0]

        # ---- input projection hoisted off the serial recurrence (one MXU pass) ----
        gi = jnp.dot(x_ref[...], wih_ref[...],
                     preferred_element_type=jnp.float32) + bi_ref[...]      # (B*S, 3H)

        whh = whh_ref[...]            # (H, 3H)
        bhn = bhn_ref[...]            # (1, H)
        scale = scale_ref[...]        # (1, H)
        shift = shift_ref[...]        # (1, H)

        # ---- GRU recurrence along B (serial); h is the (S, H) hidden state ----
        h = jnp.zeros((S, H), jnp.float32)
        for t in range(B):
            gi_t = gi[t * S:(t + 1) * S, :]                                 # (S, 3H)
            gh = jnp.dot(h, whh, preferred_element_type=jnp.float32)        # (S, 3H)
            r = jax.nn.sigmoid(gi_t[:, 0:H] + gh[:, 0:H])
            z = jax.nn.sigmoid(gi_t[:, H:2 * H] + gh[:, H:2 * H])
            cand = jnp.tanh(gi_t[:, 2 * H:3 * H] + r * (gh[:, 2 * H:3 * H] + bhn))
            h = (1.0 - z) * cand + z * h
            # fused BatchNorm1d (eval running stats); kept in VMEM only
            eo_ref[t] = h * scale + shift

        eo = eo_ref[...]                                                    # (B, S, H)

        # ---- VIP: shared hierarchical max tree over the S axis ----
        # M_n[b, i, :] = max_k eo[b, i + 2^n * k, :];  M_n = max(first half of
        # M_{n+1}, second half of M_{n+1}).  Level n's pooled value = mean_i M_n.
        pooled = [None] * vip_level
        if vip_level > L:                 # level L: kernel size 1 == identity pool
            pooled[L] = jnp.mean(eo, axis=1)
        M = eo
        for lev in range(L - 1, -1, -1):
            half = 1 << lev
            M = jnp.maximum(M[:, :half, :], M[:, half:, :])
            if lev < vip_level:
                pooled[lev] = jnp.mean(M, axis=1)                           # (B, H)

        # all per-level Linears (pre-scaled by level weights) fused into one matmul
        P = jnp.concatenate(pooled, axis=1)                                 # (B, L*H)
        acc = jnp.dot(P, vipw_ref[...],
                      preferred_element_type=jnp.float32) + vipb_ref[...]   # (B, C)
        out_ref[...] = jax.nn.sigmoid(acc)

    return fused_kernel


# --------------------------------- model wrapper ------------------------------------

def model_forward(x, p, vip_level, level_weights):
    B, S, F = x.shape
    H = p["whh"].shape[-1]
    C = p["vip_w"].shape[-1]

    # ---- host-side parameter folding (done once; all shapes tiny) ----
    wih = jnp.concatenate([p["wih"][0], p["wih"][1], p["wih"][2]], axis=1)    # (F, 3H)
    whh = jnp.concatenate([p["whh"][0], p["whh"][1], p["whh"][2]], axis=1)    # (H, 3H)
    # r/z gates: fold b_ih + b_hh together; n gate: keep b_hn separate.
    bias_i = jnp.concatenate([p["bih"][0] + p["bhh"][0],
                              p["bih"][1] + p["bhh"][1],
                              p["bih"][2]], axis=1)                           # (1, 3H)
    bhh_n = p["bhh"][2]                                                       # (1, H)
    vip_w = jnp.concatenate(
        [level_weights[n] * p["vip_w"][n] for n in range(vip_level)], axis=0)  # (L*H, C)
    vip_b = sum(level_weights[n] * p["vip_b"][n] for n in range(vip_level))    # (1, C)

    x_flat = x.reshape(B * S, F)   # contiguous; lets the kernel do a single gi matmul

    return pl.pallas_call(
        make_fused_kernel(B, S, vip_level),
        out_shape=jax.ShapeDtypeStruct((B, C), jnp.float32),
        grid_spec=pltpu.PrefetchScalarGridSpec(
            num_scalar_prefetch=0,
            grid=(1,),
            in_specs=[
                pl.BlockSpec((B * S, F), lambda i: (0, 0)),
                pl.BlockSpec((F, 3 * H), lambda i: (0, 0)),
                pl.BlockSpec((H, 3 * H), lambda i: (0, 0)),
                pl.BlockSpec((1, 3 * H), lambda i: (0, 0)),
                pl.BlockSpec((1, H), lambda i: (0, 0)),
                pl.BlockSpec((1, H), lambda i: (0, 0)),
                pl.BlockSpec((1, H), lambda i: (0, 0)),
                pl.BlockSpec((vip_level * H, C), lambda i: (0, 0)),
                pl.BlockSpec((1, C), lambda i: (0, 0)),
            ],
            out_specs=pl.BlockSpec((B, C), lambda i: (0, 0)),
            scratch_shapes=[pltpu.VMEM((B, S, H), jnp.float32)],
        ),
        compiler_params=pltpu.CompilerParams(
            dimension_semantics=("arbitrary",)),
    )(x_flat, wih, whh, bias_i, bhh_n, p["bn_scale"], p["bn_shift"], vip_w, vip_b)


# ------------------------------- pure-JAX reference ---------------------------------

def reference_forward(x, p, vip_level, level_weights):
    """Pure-JAX reference of the same forward pass (unfused, unfolded params)."""
    B, S, F = x.shape
    H = p["whh"].shape[-1]
    h = jnp.zeros((S, H), jnp.float32)
    outs = []
    for t in range(B):
        xt = x[t]
        gi_r = xt @ p["wih"][0] + p["bih"][0]
        gi_z = xt @ p["wih"][1] + p["bih"][1]
        gi_n = xt @ p["wih"][2] + p["bih"][2]
        gh_r = h @ p["whh"][0] + p["bhh"][0]
        gh_z = h @ p["whh"][1] + p["bhh"][1]
        gh_n = h @ p["whh"][2] + p["bhh"][2]
        r = jax.nn.sigmoid(gi_r + gh_r)
        z = jax.nn.sigmoid(gi_z + gh_z)
        n = jnp.tanh(gi_n + r * gh_n)
        h = (1.0 - z) * n + z * h
        outs.append(h)
    eo = jnp.stack(outs, axis=0) * p["bn_scale"] + p["bn_shift"]
    acc = jnp.zeros((B, p["vip_w"].shape[-1]), jnp.float32)
    for n in range(vip_level):
        pw = 2 ** n
        K = S // pw
        m = eo[:, 0:pw, :]
        for k in range(1, K):
            m = jnp.maximum(m, eo[:, k * pw:(k + 1) * pw, :])
        pooled = jnp.mean(m, axis=1)
        acc = acc + level_weights[n] * (pooled @ p["vip_w"][n] + p["vip_b"][n])
    return jax.nn.sigmoid(acc)


if __name__ == "__main__":
    # Model hyper-parameters (small, consistent with the module's forward)
    B, S, F, H, C = 2, 8, 16, 32, 5        # batch, seq_len, dim_feats, dim_hidden, num_class
    VIP_LEVEL = 3
    WEIGHTED_ADDITION = False
    assert math.log2(S).is_integer() and VIP_LEVEL <= math.log2(S) + 1
    level_weights = [float(2 ** n) if WEIGHTED_ADDITION else 1.0
                     for n in range(VIP_LEVEL)]

    key = jax.random.PRNGKey(0)
    ks = jax.random.split(key, 12)

    params = {
        # GRU weights, stored transposed & gate-stacked: (3, F, H) and (3, H, H)
        "wih": 0.1 * jax.random.normal(ks[0], (3, F, H), jnp.float32),
        "whh": 0.1 * jax.random.normal(ks[1], (3, H, H), jnp.float32),
        "bih": 0.1 * jax.random.normal(ks[2], (3, 1, H), jnp.float32),
        "bhh": 0.1 * jax.random.normal(ks[3], (3, 1, H), jnp.float32),
        # VIP per-level Linear: W^T stacked (L, H, C), bias (L, 1, C)
        "vip_w": 0.1 * jax.random.normal(ks[4], (VIP_LEVEL, H, C), jnp.float32),
        "vip_b": 0.1 * jax.random.normal(ks[5], (VIP_LEVEL, 1, C), jnp.float32),
    }
    # BatchNorm1d (eval): fold gamma/beta/running stats into scale & shift
    gamma = 1.0 + 0.1 * jax.random.normal(ks[6], (1, H), jnp.float32)
    beta = 0.1 * jax.random.normal(ks[7], (1, H), jnp.float32)
    running_mean = 0.1 * jax.random.normal(ks[8], (1, H), jnp.float32)
    running_var = 0.5 + jax.random.uniform(ks[9], (1, H), jnp.float32)
    eps = 1e-5
    bn_scale = gamma / jnp.sqrt(running_var + eps)
    params["bn_scale"] = bn_scale
    params["bn_shift"] = beta - running_mean * bn_scale

    x = jax.random.normal(ks[10], (B, S, F), jnp.float32)

    out = model_forward(x, params, VIP_LEVEL, level_weights)
    out = jax.block_until_ready(out)

    ref = reference_forward(x, params, VIP_LEVEL, level_weights)
    assert out.shape == (B, C)
    assert jnp.allclose(out, ref, atol=1e-4, rtol=1e-4), (out, ref)

    print("KERNEL_OK")
</pallas_src>

<mosaic_0001>
module attributes {stable_mosaic.version = 11 : i64} {
  func.func @fused_kernel(%arg0: i32, %arg1: memref<16x16xf32, #tpu.memory_space<vmem>>, %arg2: memref<16x96xf32, #tpu.memory_space<vmem>>, %arg3: memref<32x96xf32, #tpu.memory_space<vmem>>, %arg4: memref<1x96xf32, #tpu.memory_space<vmem>>, %arg5: memref<1x32xf32, #tpu.memory_space<vmem>>, %arg6: memref<1x32xf32, #tpu.memory_space<vmem>>, %arg7: memref<1x32xf32, #tpu.memory_space<vmem>>, %arg8: memref<96x5xf32, #tpu.memory_space<vmem>>, %arg9: memref<1x5xf32, #tpu.memory_space<vmem>>, %arg10: memref<2x5xf32, #tpu.memory_space<vmem>>, %arg11: memref<2x8x32xf32, #tpu.memory_space<vmem>>) attributes {dimension_semantics = [#tpu.dimension_semantics<arbitrary>], iteration_bounds = array<i64: 1>, scalar_prefetch = 0 : i64, scratch_operands = 1 : i64, tpu.core_type = #tpu.core_type<tc>, window_params = [{pipeline_mode = #tpu.pipeline_mode<synchronous>, transform_indices = @transform_0, window_bounds = array<i64: 16, 16>}, {pipeline_mode = #tpu.pipeline_mode<synchronous>, transform_indices = @transform_1, window_bounds = array<i64: 16, 96>}, {pipeline_mode = #tpu.pipeline_mode<synchronous>, transform_indices = @transform_2, window_bounds = array<i64: 32, 96>}, {pipeline_mode = #tpu.pipeline_mode<synchronous>, transform_indices = @transform_3, window_bounds = array<i64: 1, 96>}, {pipeline_mode = #tpu.pipeline_mode<synchronous>, transform_indices = @transform_4, window_bounds = array<i64: 1, 32>}, {pipeline_mode = #tpu.pipeline_mode<synchronous>, transform_indices = @transform_5, window_bounds = array<i64: 1, 32>}, {pipeline_mode = #tpu.pipeline_mode<synchronous>, transform_indices = @transform_6, window_bounds = array<i64: 1, 32>}, {pipeline_mode = #tpu.pipeline_mode<synchronous>, transform_indices = @transform_7, window_bounds = array<i64: 96, 5>}, {pipeline_mode = #tpu.pipeline_mode<synchronous>, transform_indices = @transform_8, window_bounds = array<i64: 1, 5>}, {pipeline_mode = #tpu.pipeline_mode<synchronous>, transform_indices = @transform_9, window_bounds = array<i64: 2, 5>}]} {
    %c0 = arith.constant 0 : index
    %c0_0 = arith.constant 0 : index
    %0 = vector.load %arg1[%c0, %c0_0] : memref<16x16xf32, #tpu.memory_space<vmem>>, vector<16x16xf32>
    %c0_1 = arith.constant 0 : index
    %c0_2 = arith.constant 0 : index
    %1 = vector.load %arg2[%c0_1, %c0_2] : memref<16x96xf32, #tpu.memory_space<vmem>>, vector<16x96xf32>
    %cst = arith.constant dense<0.000000e+00> : vector<16x96xf32>
    %2 = tpu.matmul %0, %1, %cst {dimension_numbers = #tpu.dot_dimension_numbers<[1], [0], [0], [1], [0, 0, 1, 1], [], []>} : vector<16x16xf32>, vector<16x96xf32>, vector<16x96xf32> -> vector<16x96xf32>
    %c0_3 = arith.constant 0 : index
    %c0_4 = arith.constant 0 : index
    %3 = vector.load %arg4[%c0_3, %c0_4] : memref<1x96xf32, #tpu.memory_space<vmem>>, vector<1x96xf32>
    %4 = vector.broadcast %3 : vector<1x96xf32> to vector<16x96xf32>
    %5 = arith.addf %2, %4 : vector<16x96xf32>
    %c0_5 = arith.constant 0 : index
    %c0_6 = arith.constant 0 : index
    %6 = vector.load %arg3[%c0_5, %c0_6] : memref<32x96xf32, #tpu.memory_space<vmem>>, vector<32x96xf32>
    %c0_7 = arith.constant 0 : index
    %c0_8 = arith.constant 0 : index
    %7 = vector.load %arg5[%c0_7, %c0_8] : memref<1x32xf32, #tpu.memory_space<vmem>>, vector<1x32xf32>
    %c0_9 = arith.constant 0 : index
    %c0_10 = arith.constant 0 : index
    %8 = vector.load %arg6[%c0_9, %c0_10] : memref<1x32xf32, #tpu.memory_space<vmem>>, vector<1x32xf32>
    %c0_11 = arith.constant 0 : index
    %c0_12 = arith.constant 0 : index
    %9 = vector.load %arg7[%c0_11, %c0_12] : memref<1x32xf32, #tpu.memory_space<vmem>>, vector<1x32xf32>
    %cst_13 = arith.constant 0.000000e+00 : f32
    %10 = vector.broadcast %cst_13 : f32 to vector<8x32xf32>
    %11 = vector.extract_strided_slice %5 {offsets = [0, 0], sizes = [8, 96], strides = [1, 1]} : vector<16x96xf32> to vector<8x96xf32>
    %cst_14 = arith.constant dense<0.000000e+00> : vector<8x96xf32>
    %12 = tpu.matmul %10, %6, %cst_14 {dimension_numbers = #tpu.dot_dimension_numbers<[1], [0], [0], [1], [0, 0, 1, 1], [], []>} : vector<8x32xf32>, vector<32x96xf32>, vector<8x96xf32> -> vector<8x96xf32>
    %13 = vector.extract_strided_slice %11 {offsets = [0, 0], sizes = [8, 32], strides = [1, 1]} : vector<8x96xf32> to vector<8x32xf32>
    %14 = vector.extract_strided_slice %12 {offsets = [0, 0], sizes = [8, 32], strides = [1, 1]} : vector<8x96xf32> to vector<8x32xf32>
    %15 = arith.addf %13, %14 : vector<8x32xf32>
    %16 = arith.negf %15 : vector<8x32xf32>
    %17 = math.exp %16 : vector<8x32xf32>
    %cst_15 = arith.constant 1.000000e+00 : f32
    %18 = vector.broadcast %cst_15 : f32 to vector<8x32xf32>
    %19 = arith.addf %18, %17 : vector<8x32xf32>
    %20 = arith.divf %18, %19 : vector<8x32xf32>
    %21 = vector.extract_strided_slice %11 {offsets = [0, 32], sizes = [8, 32], strides = [1, 1]} : vector<8x96xf32> to vector<8x32xf32>
    %22 = vector.extract_strided_slice %12 {offsets = [0, 32], sizes = [8, 32], strides = [1, 1]} : vector<8x96xf32> to vector<8x32xf32>
    %23 = arith.addf %21, %22 : vector<8x32xf32>
    %24 = arith.negf %23 : vector<8x32xf32>
    %25 = math.exp %24 : vector<8x32xf32>
    %cst_16 = arith.constant 1.000000e+00 : f32
    %26 = vector.broadcast %cst_16 : f32 to vector<8x32xf32>
    %27 = arith.addf %26, %25 : vector<8x32xf32>
    %28 = arith.divf %26, %27 : vector<8x32xf32>
    %29 = vector.extract_strided_slice %11 {offsets = [0, 64], sizes = [8, 32], strides = [1, 1]} : vector<8x96xf32> to vector<8x32xf32>
    %30 = vector.extract_strided_slice %12 {offsets = [0, 64], sizes = [8, 32], strides = [1, 1]} : vector<8x96xf32> to vector<8x32xf32>
    %31 = vector.broadcast %7 : vector<1x32xf32> to vector<8x32xf32>
    %32 = arith.addf %30, %31 : vector<8x32xf32>
    %33 = arith.mulf %20, %32 : vector<8x32xf32>
    %34 = arith.addf %29, %33 : vector<8x32xf32>
    %35 = math.tanh %34 : vector<8x32xf32>
    %cst_17 = arith.constant 1.000000e+00 : f32
    %36 = vector.broadcast %cst_17 : f32 to vector<8x32xf32>
    %37 = arith.subf %36, %28 : vector<8x32xf32>
    %38 = arith.mulf %37, %35 : vector<8x32xf32>
    %39 = arith.mulf %28, %10 : vector<8x32xf32>
    %40 = arith.addf %38, %39 : vector<8x32xf32>
    %41 = vector.broadcast %8 : vector<1x32xf32> to vector<8x32xf32>
    %42 = arith.mulf %40, %41 : vector<8x32xf32>
    %43 = vector.broadcast %9 : vector<1x32xf32> to vector<8x32xf32>
    %44 = arith.addf %42, %43 : vector<8x32xf32>
    %c0_18 = arith.constant 0 : index
    %c0_19 = arith.constant 0 : index
    %c0_20 = arith.constant 0 : index
    %45 = vector.load %arg11[%c0_18, %c0_19, %c0_20] : memref<2x8x32xf32, #tpu.memory_space<vmem>>, vector<1x8x32xf32>
    %46 = vector.shape_cast %45 : vector<1x8x32xf32> to vector<8x32xf32>
    %47 = vector.shape_cast %44 : vector<8x32xf32> to vector<1x8x32xf32>
    tpu.vector_store %arg11[%c0_18, %c0_19, %c0_20], %47 {strides = array<i32>} : memref<2x8x32xf32, #tpu.memory_space<vmem>>, vector<1x8x32xf32>,
    %48 = vector.extract_strided_slice %5 {offsets = [8, 0], sizes = [8, 96], strides = [1, 1]} : vector<16x96xf32> to vector<8x96xf32>
    %cst_21 = arith.constant dense<0.000000e+00> : vector<8x96xf32>
    %49 = tpu.matmul %40, %6, %cst_21 {dimension_numbers = #tpu.dot_dimension_numbers<[1], [0], [0], [1], [0, 0, 1, 1], [], []>} : vector<8x32xf32>, vector<32x96xf32>, vector<8x96xf32> -> vector<8x96xf32>
    %50 = vector.extract_strided_slice %48 {offsets = [0, 0], sizes = [8, 32], strides = [1, 1]} : vector<8x96xf32> to vector<8x32xf32>
    %51 = vector.extract_strided_slice %49 {offsets = [0, 0], sizes = [8, 32], strides = [1, 1]} : vector<8x96xf32> to vector<8x32xf32>
    %52 = arith.addf %50, %51 : vector<8x32xf32>
    %53 = arith.negf %52 : vector<8x32xf32>
    %54 = math.exp %53 : vector<8x32xf32>
    %cst_22 = arith.constant 1.000000e+00 : f32
    %55 = vector.broadcast %cst_22 : f32 to vector<8x32xf32>
    %56 = arith.addf %55, %54 : vector<8x32xf32>
    %57 = arith.divf %55, %56 : vector<8x32xf32>
    %58 = vector.extract_strided_slice %48 {offsets = [0, 32], sizes = [8, 32], strides = [1, 1]} : vector<8x96xf32> to vector<8x32xf32>
    %59 = vector.extract_strided_slice %49 {offsets = [0, 32], sizes = [8, 32], strides = [1, 1]} : vector<8x96xf32> to vector<8x32xf32>
    %60 = arith.addf %58, %59 : vector<8x32xf32>
    %61 = arith.negf %60 : vector<8x32xf32>
    %62 = math.exp %61 : vector<8x32xf32>
    %cst_23 = arith.constant 1.000000e+00 : f32
    %63 = vector.broadcast %cst_23 : f32 to vector<8x32xf32>
    %64 = arith.addf %63, %62 : vector<8x32xf32>
    %65 = arith.divf %63, %64 : vector<8x32xf32>
    %66 = vector.extract_strided_slice %48 {offsets = [0, 64], sizes = [8, 32], strides = [1, 1]} : vector<8x96xf32> to vector<8x32xf32>
    %67 = vector.extract_strided_slice %49 {offsets = [0, 64], sizes = [8, 32], strides = [1, 1]} : vector<8x96xf32> to vector<8x32xf32>
    %68 = vector.broadcast %7 : vector<1x32xf32> to vector<8x32xf32>
    %69 = arith.addf %67, %68 : vector<8x32xf32>
    %70 = arith.mulf %57, %69 : vector<8x32xf32>
    %71 = arith.addf %66, %70 : vector<8x32xf32>
    %72 = math.tanh %71 : vector<8x32xf32>
    %cst_24 = arith.constant 1.000000e+00 : f32
    %73 = vector.broadcast %cst_24 : f32 to vector<8x32xf32>
    %74 = arith.subf %73, %65 : vector<8x32xf32>
    %75 = arith.mulf %74, %72 : vector<8x32xf32>
    %76 = arith.mulf %65, %40 : vector<8x32xf32>
    %77 = arith.addf %75, %76 : vector<8x32xf32>
    %78 = vector.broadcast %8 : vector<1x32xf32> to vector<8x32xf32>
    %79 = arith.mulf %77, %78 : vector<8x32xf32>
    %80 = vector.broadcast %9 : vector<1x32xf32> to vector<8x32xf32>
    %81 = arith.addf %79, %80 : vector<8x32xf32>
    %c1 = arith.constant 1 : index
    %c0_25 = arith.constant 0 : index
    %c0_26 = arith.constant 0 : index
    %82 = vector.load %arg11[%c1, %c0_25, %c0_26] : memref<2x8x32xf32, #tpu.memory_space<vmem>>, vector<1x8x32xf32>
    %83 = vector.shape_cast %82 : vector<1x8x32xf32> to vector<8x32xf32>
    %84 = vector.shape_cast %81 : vector<8x32xf32> to vector<1x8x32xf32>
    tpu.vector_store %arg11[%c1, %c0_25, %c0_26], %84 {strides = array<i32>} : memref<2x8x32xf32, #tpu.memory_space<vmem>>, vector<1x8x32xf32>,
    %c0_27 = arith.constant 0 : index
    %c0_28 = arith.constant 0 : index
    %c0_29 = arith.constant 0 : index
    %85 = vector.load %arg11[%c0_27, %c0_28, %c0_29] : memref<2x8x32xf32, #tpu.memory_space<vmem>>, vector<2x8x32xf32>
    %86 = vector.extract_strided_slice %85 {offsets = [0, 0, 0], sizes = [2, 4, 32], strides = [1, 1, 1]} : vector<2x8x32xf32> to vector<2x4x32xf32>
    %87 = vector.extract_strided_slice %85 {offsets = [0, 4, 0], sizes = [2, 4, 32], strides = [1, 1, 1]} : vector<2x8x32xf32> to vector<2x4x32xf32>
    %88 = arith.maximumf %86, %87 : vector<2x4x32xf32>
    %cst_30 = arith.constant dense<0.000000e+00> : vector<2x32xf32>
    %89 = vector.multi_reduction <add>, %88, %cst_30 [1] : vector<2x4x32xf32> to vector<2x32xf32>
    %cst_31 = arith.constant 4.000000e+00 : f32
    %90 = vector.broadcast %cst_31 : f32 to vector<2x32xf32>
    %91 = arith.divf %89, %90 : vector<2x32xf32>
    %92 = vector.extract_strided_slice %88 {offsets = [0, 0, 0], sizes = [2, 2, 32], strides = [1, 1, 1]} : vector<2x4x32xf32> to vector<2x2x32xf32>
    %93 = vector.extract_strided_slice %88 {offsets = [0, 2, 0], sizes = [2, 2, 32], strides = [1, 1, 1]} : vector<2x4x32xf32> to vector<2x2x32xf32>
    %94 = arith.maximumf %92, %93 : vector<2x2x32xf32>
    %cst_32 = arith.constant dense<0.000000e+00> : vector<2x32xf32>
    %95 = vector.multi_reduction <add>, %94, %cst_32 [1] : vector<2x2x32xf32> to vector<2x32xf32>
    %cst_33 = arith.constant 2.000000e+00 : f32
    %96 = vector.broadcast %cst_33 : f32 to vector<2x32xf32>
    %97 = arith.divf %95, %96 : vector<2x32xf32>
    %98 = vector.extract_strided_slice %94 {offsets = [0, 0, 0], sizes = [2, 1, 32], strides = [1, 1, 1]} : vector<2x2x32xf32> to vector<2x1x32xf32>
    %99 = vector.extract_strided_slice %94 {offsets = [0, 1, 0], sizes = [2, 1, 32], strides = [1, 1, 1]} : vector<2x2x32xf32> to vector<2x1x32xf32>
    %100 = arith.maximumf %98, %99 : vector<2x1x32xf32>
    %cst_34 = arith.constant dense<0.000000e+00> : vector<2x32xf32>
    %101 = vector.multi_reduction <add>, %100, %cst_34 [1] : vector<2x1x32xf32> to vector<2x32xf32>
    %cst_35 = arith.constant 1.000000e+00 : f32
    %102 = vector.broadcast %cst_35 : f32 to vector<2x32xf32>
    %103 = arith.divf %101, %102 : vector<2x32xf32>
    %104 = tpu.concatenate %103, %97, %91 in 1 : vector<2x32xf32>, vector<2x32xf32>, vector<2x32xf32> -> vector<2x96xf32>
    %c0_36 = arith.constant 0 : index
    %c0_37 = arith.constant 0 : index
    %105 = vector.load %arg8[%c0_36, %c0_37] : memref<96x5xf32, #tpu.memory_space<vmem>>, vector<96x5xf32>
    %cst_38 = arith.constant dense<0.000000e+00> : vector<2x5xf32>
    %106 = tpu.matmul %104, %105, %cst_38 {dimension_numbers = #tpu.dot_dimension_numbers<[1], [0], [0], [1], [0, 0, 1, 1], [], []>} : vector<2x96xf32>, vector<96x5xf32>, vector<2x5xf32> -> vector<2x5xf32>
    %c0_39 = arith.constant 0 : index
    %c0_40 = arith.constant 0 : index
    %107 = vector.load %arg9[%c0_39, %c0_40] : memref<1x5xf32, #tpu.memory_space<vmem>>, vector<1x5xf32>
    %108 = vector.broadcast %107 : vector<1x5xf32> to vector<2x5xf32>
    %109 = arith.addf %106, %108 : vector<2x5xf32>
    %110 = arith.negf %109 : vector<2x5xf32>
    %111 = math.exp %110 : vector<2x5xf32>
    %cst_41 = arith.constant 1.000000e+00 : f32
    %112 = vector.broadcast %cst_41 : f32 to vector<2x5xf32>
    %113 = arith.addf %112, %111 : vector<2x5xf32>
    %114 = arith.divf %112, %113 : vector<2x5xf32>
    %c0_42 = arith.constant 0 : index
    %c0_43 = arith.constant 0 : index
    %115 = vector.load %arg10[%c0_42, %c0_43] : memref<2x5xf32, #tpu.memory_space<vmem>>, vector<2x5xf32>
    tpu.vector_store %arg10[%c0_42, %c0_43], %114 {strides = array<i32>} : memref<2x5xf32, #tpu.memory_space<vmem>>, vector<2x5xf32>,
    return
  }
  func.func @transform_0(%arg0: i32) -> (i32, i32) {
    %c0_i32 = arith.constant 0 : i32
    %c0_i32_0 = arith.constant 0 : i32
    %c0_i32_1 = arith.constant 0 : i32
    return %c0_i32, %c0_i32_0 : i32, i32
  }
  func.func @transform_1(%arg0: i32) -> (i32, i32) {
    %c0_i32 = arith.constant 0 : i32
    %c0_i32_0 = arith.constant 0 : i32
    %c0_i32_1 = arith.constant 0 : i32
    return %c0_i32, %c0_i32_0 : i32, i32
  }
  func.func @transform_2(%arg0: i32) -> (i32, i32) {
    %c0_i32 = arith.constant 0 : i32
    %c0_i32_0 = arith.constant 0 : i32
    %c0_i32_1 = arith.constant 0 : i32
    return %c0_i32, %c0_i32_0 : i32, i32
  }
  func.func @transform_3(%arg0: i32) -> (i32, i32) {
    %c0_i32 = arith.constant 0 : i32
    %c0_i32_0 = arith.constant 0 : i32
    %c0_i32_1 = arith.constant 0 : i32
    return %c0_i32, %c0_i32_0 : i32, i32
  }
  func.func @transform_4(%arg0: i32) -> (i32, i32) {
    %c0_i32 = arith.constant 0 : i32
    %c0_i32_0 = arith.constant 0 : i32
    %c0_i32_1 = arith.constant 0 : i32
    return %c0_i32, %c0_i32_0 : i32, i32
  }
  func.func @transform_5(%arg0: i32) -> (i32, i32) {
    %c0_i32 = arith.constant 0 : i32
    %c0_i32_0 = arith.constant 0 : i32
    %c0_i32_1 = arith.constant 0 : i32
    return %c0_i32, %c0_i32_0 : i32, i32
  }
  func.func @transform_6(%arg0: i32) -> (i32, i32) {
    %c0_i32 = arith.constant 0 : i32
    %c0_i32_0 = arith.constant 0 : i32
    %c0_i32_1 = arith.constant 0 : i32
    return %c0_i32, %c0_i32_0 : i32, i32
  }
  func.func @transform_7(%arg0: i32) -> (i32, i32) {
    %c0_i32 = arith.constant 0 : i32
    %c0_i32_0 = arith.constant 0 : i32
    %c0_i32_1 = arith.constant 0 : i32
    return %c0_i32, %c0_i32_0 : i32, i32
  }
  func.func @transform_8(%arg0: i32) -> (i32, i32) {
    %c0_i32 = arith.constant 0 : i32
    %c0_i32_0 = arith.constant 0 : i32
    %c0_i32_1 = arith.constant 0 : i32
    return %c0_i32, %c0_i32_0 : i32, i32
  }
  func.func @transform_9(%arg0: i32) -> (i32, i32) {
    %c0_i32 = arith.constant 0 : i32
    %c0_i32_0 = arith.constant 0 : i32
    %c0_i32_1 = arith.constant 0 : i32
    return %c0_i32, %c0_i32_0 : i32, i32
  }
}

</mosaic_0001>

<bundles_post_ra>
// kernel: tpu_custom_call.1
= control target key start
LH: loop header
LB: loop body
LE: loop exit
PB: predicated region body
PF: predicated region fallthrough
CT: control target
= control target key end

     0   :  { %vm41_vm0 = vcmask 130048   ;;  %s638_s0 = inlined_call_operand.vmem [shape: f32[16,16], index: 0, kind: input, shape index: {}]   ;;  %s639_s1 = inlined_call_operand.vmem [shape: f32[16,96], index: 1, kind: input, shape index: {}]   ;;  %s640_s2 = inlined_call_operand.vmem [shape: f32[32,96], index: 2, kind: input, shape index: {}]   ;;  %s641_s3 = inlined_call_operand.vmem [shape: f32[1,96], index: 3, kind: input, shape index: {}]   ;;  %s642_s4 = inlined_call_operand.vmem [shape: f32[1,32], index: 4, kind: input, shape index: {}]   ;;  %s643_s5 = inlined_call_operand.vmem [shape: f32[1,32], index: 5, kind: input, shape index: {}]   ;;  %s644_s6 = inlined_call_operand.vmem [shape: f32[1,32], index: 6, kind: input, shape index: {}]   ;;  %s645_s7 = inlined_call_operand.vmem [shape: f32[96,5], index: 7, kind: input, shape index: {}]   ;;  %s646_s8 = inlined_call_operand.vmem [shape: f32[1,5], index: 8, kind: input, shape index: {}]   ;;  %s647_s9 = inlined_call_operand.hbm [shape: f32[2,5], index: 9, kind: output, shape index: {}]  }
   0x1   :  { %v74_v0 = vld [vmem:[%s640_s2 + $0x18] sm:$0xff]  ;;  %v36_v1 = vld [vmem:[%s639_s1 + $0x8] sm:$0xff]  ;;  %v73_v2 = vld [vmem:[%s640_s2 + $0x10] sm:$0xff] }
   0x2   :  { %94 = vmatpush.msra.mxu1 %v74_v0  ;;  %62 = vmatpush.msra.mxu0 %v36_v1  ;;  %v35_v3 = vld [vmem:[%s639_s1] sm:$0xff]  ;;  %v72_v5 = vld [vmem:[%s640_s2 + $0x8] sm:$0xff]  ;;  %s476_s1 = smov 64  }
   0x3   :  { %v33_v4 = vld [vmem:[%s638_s0] sm:$0xff]  ;;  %181 = vmatpush.msra.mxu2 %v74_v0 }
   0x4   :  { %v425_v6 = vld [vmem:[%s642_s4] ss:$0 sm:$0xff]  ;;  %95 = vmatpush.msra.mxu1 %v73_v2  ;;  %63 = vmatpush.msra.mxu0 %v35_v3 }
   0x5   :  { %v71_v7 = vld [vmem:[%s640_s2] sm:$0xff]  ;;  %411 = vmatmul.msk.f32.vlgmr.msra.gmra.mxu0 %vm41_vm0, %v33_v4  ;;  %124 = vrot.lane.b32.xlu0 %v425_v6, %s476_s1 }
   0x6   :  { %14 = vsyncpa [#allocation4], 0  ;;  %96 = vmatpush.msra.mxu1 %v72_v5  ;;  %182 = vmatpush.msra.mxu2 %v73_v2  ;;  %v477_v8 = vmov 0.0   ;;  %v426_v12 = vld [vmem:[%s641_s3] ss:$0 sm:$0xff]  ;;  %s478_s3 = smov 96  }
   0x7   :  { %v34_v39 = vld [vmem:[%s638_s0 + $0x8] sm:$0xff]  ;;  %vm78_vm5 = vcmask 261120   ;;  %v427_v43 = vld [vmem:[%s643_s5] ss:$0 sm:$0xff]  ;;  %s479_s29 = smov 32   ;;  %vm247_vm10 = vcmask 257024  }
   0x8   :  { %97 = vmatpush.msra.mxu1 %v71_v7  ;;  %183 = vmatpush.msra.mxu2 %v72_v5  ;;  %v428_v62 = vld [vmem:[%s644_s6] ss:$0 sm:$0xff]  ;;  %vm279_vm11 = vcmask 254976   ;;  %vm316_vm13 = vcmask 1041409   ;;  %vm332_vm15 = vcmask 523264  }
   0x9   :  { %98 = vmatmul.f32.vlgmr.msra.gmra.mxu1 %v477_v8 }
   0xa   :  { %184 = vmatpush.msra.mxu2 %v71_v7 }
   0xd   :  { %412 = vmatmul.msk.f32.gmra.mxu0 %vm41_vm0, %v34_v39  ;;  %vm350_vm0 = vcmask 785408  }
  0x77   :  { %v125_v9 = vpop.permute.xlu0 %124 }
  0x82   :  { %v65_v13 = vpop.f32.mrf.mxu0 }
  0x83   :  { %v66_v14 = vadd.f32 %v426_v12, %v65_v13 }
  0x86   :  { %v99_v10 = vpop.f32.mrf.mxu1 }
  0x87   :  { %v127_v11 = vadd.f32 %v125_v9, %v99_v10  ;;  %v102_v15 = vadd.f32 %v99_v10, %v66_v14 }
  0x89   :  { %129 = vrot.lane.b32.xlu0 %v127_v11, %s476_s1  ;;  %v413_v16 = vmul.f32 -1.442695, %v102_v15 }
  0x8a   :  { %v68_v44 = vpop.f32.mrf.mxu0 }
  0x8b   :  { %430 = vpow2.f32 %v413_v16  ;;  %v69_v45 = vadd.f32 %v426_v12, %v68_v44 }
  0x91   :  { %v431_v17 = vpop.eup %430 }
  0x92   :  { %v106_v18 = vadd.f32 1.0, %v431_v17 }
  0x94   :  { %432 = vrcp.f32 %v106_v18  ;;  %v118_v24 = vand.u32 2147483648, %v106_v18  ;;  %vm112_vm2 = vweird.f32 %v106_v18  ;;  %v116_v25 = vand.u32 2147483647, %v106_v18 }
  0x96   :  { %v119_v27 = vor.u32 1.1754944e-38, %v118_v24  ;;  %vm117_vm4 = vcmp.eq.f32.partialorder %v116_v25, 8.507059e+37  ;;  %v481_v25 = vmov 2.0  }
  0x9a   :  { %v433_v19 = vpop.eup %432 }
  0x9b   :  { %v108_v20 = vmul.f32 %v433_v19, %v106_v18  ;;  %vm113_vm1 = vweird.f32 %v433_v19  ;;  %v480_v18 = vmov 4.0  }
  0x9c   :  { %vm114_vm3 = vmor %vm112_vm2, %vm113_vm1 }
  0x9d   :  { %v109_v21 = vsub.f32 1.0, %v108_v20 }
  0x9f   :  { %v110_v22 = vmul.f32 %v433_v19, %v109_v21 }
  0xa1   :  { %v111_v23 = vadd.f32 %v433_v19, %v110_v22  ;;  %v345_v22 = vld [vmem:[%s645_s7 + $0x58] sm:$0xff] }
  0xa2   :  { %358 = vmatpush.msra.mxu3 %v345_v22 }
  0xa3   :  { %v115_v26 = vsel %vm114_vm3, %v433_v19, %v111_v23  ;;  %v344_v23 = vld [vmem:[%s645_s7 + $0x50] sm:$0xff] }
  0xa4   :  { %v120_v29 = vsel %vm117_vm4, %v119_v27, %v115_v26  ;;  %v343_v27 = vld [vmem:[%s645_s7 + $0x48] sm:$0xff]  ;;  %359 = vmatpush.msra.mxu3 %v344_v23  ;;  %vm393_vm4 = vcmask 33792  }
  0xa5   :  { %v139_v34 = vsub.f32 1.0, %v120_v29  ;;  %v145_v36 = vmul.f32 0.0, %v120_v29 }
  0xa6   :  { %360 = vmatpush.msra.mxu3 %v343_v27 }
  0xfb   :  { %v130_v28 = vpop.permute.xlu0 %129 }
  0xfc   :  { %v132_v30 = vmul.f32 %v130_v28, %v120_v29  ;;  %v342_v29 = vld [vmem:[%s645_s7 + $0x40] sm:$0xff] }
  0xfd   :  { %361 = vmatpush.msra.mxu3 %v342_v29 }
  0xfe   :  { %134 = vrot.lane.b32.xlu1 %v132_v30, %s476_s1 }
 0x170   :  { %v135_v31 = vpop.permute.xlu1 %134 }
 0x171   :  { %v137_v32 = vadd.f32 %v135_v31, %v66_v14 }
 0x173   :  { %434 = vtanh.f32 %v137_v32 }
 0x179   :  { %v435_v33 = vpop.eup %434 }
 0x17a   :  { %141 = vrot.lane.b32.xlu1 %v435_v33, %s478_s3  ;;  %v341_v33 = vld [vmem:[%s645_s7 + $0x38] sm:$0xff] }
 0x17b   :  { %362 = vmatpush.msra.mxu3 %v341_v33 }
 0x1ec   :  { %v142_v35 = vpop.permute.xlu1 %141 }
 0x1ed   :  { %v144_v37 = vmul.f32 %v142_v35, %v139_v34 }
 0x1ef   :  { %v146_v38 = vadd.f32 %v145_v36, %v144_v37  ;;  %v340_v37 = vld [vmem:[%s645_s7 + $0x30] sm:$0xff] }
 0x1f0   :  { %363 = vmatpush.msra.mxu3 %v340_v37 }
 0x1f1   :  { %165 = vrot.lane.b32.xlu2 %v146_v38, %s478_s3 }
 0x24b   :  { %v166_v40 = vpop.permute.xlu2 %165 }
 0x24c   :  { %414 = vmatmul.msk.f32.vlgmr.msra.gmra.mxu2 %vm78_vm5, %v166_v40 }
 0x2cf   :  { %v186_v41 = vpop.f32.mrf.mxu2 }
 0x2d0   :  { %v209_v42 = vadd.f32 %v186_v41, %v125_v9  ;;  %v189_v46 = vadd.f32 %v186_v41, %v69_v45 }
 0x2d2   :  { %211 = vrot.lane.b32.xlu2 %v209_v42, %s476_s1  ;;  %v415_v47 = vmul.f32 -1.442695, %v189_v46  ;;  %v338_v46 = vld [vmem:[%s645_s7 + $0x20] sm:$0xff] }
 0x2d4   :  { %436 = vpow2.f32 %v415_v47 }
 0x2da   :  { %149 = vrot.lane.b32.xlu2 %v427_v43, %s479_s29  ;;  %v437_v48 = vpop.eup %436  ;;  %v339_v43 = vld [vmem:[%s645_s7 + $0x28] sm:$0xff] }
 0x2db   :  { %v193_v49 = vadd.f32 1.0, %v437_v48  ;;  %364 = vmatpush.msra.mxu3 %v339_v43 }
 0x2dd   :  { %438 = vrcp.f32 %v193_v49  ;;  %v205_v55 = vand.u32 2147483648, %v193_v49  ;;  %vm199_vm7 = vweird.f32 %v193_v49  ;;  %v203_v56 = vand.u32 2147483647, %v193_v49  ;;  %365 = vmatpush.msra.mxu3 %v338_v46 }
 0x2df   :  { %v206_v58 = vor.u32 1.1754944e-38, %v205_v55  ;;  %vm204_vm9 = vcmp.eq.f32.partialorder %v203_v56, 8.507059e+37 }
 0x2e3   :  { %v439_v50 = vpop.eup %438 }
 0x2e4   :  { %v195_v51 = vmul.f32 %v439_v50, %v193_v49  ;;  %vm200_vm6 = vweird.f32 %v439_v50 }
 0x2e5   :  { %vm201_vm8 = vmor %vm199_vm7, %vm200_vm6 }
 0x2e6   :  { %v196_v52 = vsub.f32 1.0, %v195_v51 }
 0x2e8   :  { %v197_v53 = vmul.f32 %v439_v50, %v196_v52 }
 0x2ea   :  { %v198_v54 = vadd.f32 %v439_v50, %v197_v53  ;;  %v337_v53 = vld [vmem:[%s645_s7 + $0x18] sm:$0xff] }
 0x2eb   :  { %366 = vmatpush.msra.mxu3 %v337_v53 }
 0x2ec   :  { %v202_v57 = vsel %vm201_vm8, %v439_v50, %v198_v54 }
 0x2ed   :  { %v207_v60 = vsel %vm204_vm9, %v206_v58, %v202_v57 }
 0x2ee   :  { %v221_v6 = vsub.f32 1.0, %v207_v60  ;;  %v227_v8 = vmul.f32 %v207_v60, %v146_v38 }
 0x32c   :  { %v212_v59 = vpop.permute.xlu2 %211 }
 0x32d   :  { %v214_v61 = vmul.f32 %v212_v59, %v207_v60 }
 0x32f   :  { %216 = vrot.lane.b32.xlu0 %v214_v61, %s476_s1 }
 0x334   :  { %v150_v2 = vpop.permute.xlu2 %149 }
 0x335   :  { %v152_v4 = vmul.f32 %v150_v2, %v146_v38 }
 0x337   :  { %155 = vrot.lane.b32.xlu0 %v428_v62, %s479_s29 }
 0x3a1   :  { %v217_v63 = vpop.permute.xlu0 %216 }
 0x3a2   :  { %v219_v0 = vadd.f32 %v217_v63, %v69_v45 }
 0x3a4   :  { %440 = vtanh.f32 %v219_v0 }
 0x3a5   :  { %442 = vrcp.f32 %v480_v18 }
 0x3a6   :  { %444 = vrcp.f32 %v481_v25  ;;  %v335_v25 = vld [vmem:[%s645_s7 + $0x8] sm:$0xff] }
 0x3a9   :  { %v156_v3 = vpop.permute.xlu0 %155 }
 0x3aa   :  { %v441_v1 = vpop.eup %440  ;;  %v158_v5 = vadd.f32 %v156_v3, %v152_v4 }
 0x3ab   :  { %223 = vrot.lane.b32.xlu1 %v441_v1, %s478_s3  ;;  %v443_v28 = vpop.eup %442 }
 0x3ac   :  { %v263_v32 = vmul.f32 4.0, %v443_v28  ;;  %v445_v34 = vpop.eup %444  ;;  %vm267_vm12 = vweird.f32 %v443_v28 }
 0x3ad   :  { %v295_v42 = vmul.f32 2.0, %v445_v34  ;;  %vm299_vm14 = vweird.f32 %v445_v34 }
 0x3ae   :  { %v264_v41 = vsub.f32 1.0, %v263_v32 }
 0x3af   :  { %v296_v52 = vsub.f32 1.0, %v295_v42 }
 0x3b0   :  { %v265_v50 = vmul.f32 %v443_v28, %v264_v41 }
 0x3b1   :  { %v297_v63 = vmul.f32 %v445_v34, %v296_v52 }
 0x3b2   :  { %v266_v62 = vadd.f32 %v443_v28, %v265_v50 }
 0x3b3   :  { %160 = vrot.lane.b32.xlu1 %v158_v5, %s478_s3 }
 0x41d   :  { %v224_v7 = vpop.permute.xlu1 %223 }
 0x41e   :  { %v226_v9 = vmul.f32 %v224_v7, %v221_v6 }
 0x420   :  { %v228_v10 = vadd.f32 %v227_v8, %v226_v9  ;;  %v268_v9 = vsel %vm267_vm12, %v443_v28, %v266_v62 }
 0x422   :  { %v229_v11 = vmul.f32 %v228_v10, %v150_v2  ;;  %v298_v10 = vadd.f32 %v445_v34, %v297_v63 }
 0x424   :  { %v230_v12 = vadd.f32 %v229_v11, %v156_v3  ;;  %v300_v18 = vsel %vm299_vm14, %v445_v34, %v298_v10 }
 0x425   :  { %v161_v13 = vpop.permute.xlu1 %160 }
 0x426   :  { %163 = vst.msk [vmem:[#allocation2] sm:$0xff] %vm78_vm5, %v161_v13  ;;  %232 = vrot.lane.b32.xlu2 %v230_v12, %s478_s3 }
 0x42d   :  { %v237_v14 = vld [vmem:[#allocation2] sm:$0xff] }
 0x42e   :  { %v241_v15 = vrot.slane %v237_v14, 4 }
 0x430   :  { %v245_v16 = vmax.f32 %v237_v14, %v241_v15 }
 0x432   :  { %v273_v17 = vrot.slane %v245_v16, 2  ;;  %v248_v19 = vsel %vm247_vm10, %v245_v16, 0.0 }
 0x433   :  { %v249_v24 = vrot.slane %v248_v19, 4 }
 0x434   :  { %v277_v20 = vmax.f32 %v245_v16, %v273_v17 }
 0x435   :  { %v250_v30 = vadd.f32 %v249_v24, %v248_v19  ;;  %v336_v24 = vld [vmem:[%s645_s7 + $0x10] sm:$0xff] }
 0x436   :  { %v280_v26 = vsel %vm279_vm11, %v277_v20, 0.0  ;;  %v305_v56 = vrot.slane %v277_v20, 1  ;;  %367 = vmatpush.msra.mxu3 %v336_v24 }
 0x437   :  { %v281_v31 = vrot.slane %v280_v26, 4  ;;  %v251_v38 = vrot.slane %v250_v30, 2 }
 0x438   :  { %v309_v3 = vmax.f32 %v277_v20, %v305_v56  ;;  %368 = vmatpush.msra.mxu3 %v335_v25 }
 0x439   :  { %v282_v39 = vadd.f32 %v281_v31, %v280_v26  ;;  %v252_v47 = vadd.f32 %v251_v38, %v250_v30  ;;  %v334_v26 = vld [vmem:[%s645_s7] sm:$0xff]  ;;  %s482_s7 = smov [#allocation3]  }
 0x43a   :  { %369 = vmatpush.msra.mxu3 %v334_v26  ;;  %v429_v31 = vld [vmem:[%s646_s8] ss:$0 sm:$0xff]  ;;  %s400_s0 = sshll.u32 %s482_s7, 4  ;;  %s402_s8 = sshll.u32 %s647_s9, 4  ;;  %s401_s0 = int_to_ptr.vmem [resolvable:$true] %s400_s0  ;;  %s403_s8 = int_to_ptr.hbm [resolvable:$true] %s402_s8 }
 0x43b   :  { %v283_v49 = vrot.slane %v282_v39, 2  ;;  %v253_v58 = vrot.slane %v252_v47, 1 }
 0x43d   :  { %v284_v60 = vadd.f32 %v283_v49, %v282_v39  ;;  %v254_v5 = vadd.f32 %v253_v58, %v252_v47 }
 0x43f   :  { %v285_v7 = vrot.slane %v284_v60, 1  ;;  %v269_v14 = vmul.f32 %v268_v9, %v254_v5 }
 0x441   :  { %v286_v16 = vadd.f32 %v285_v7, %v284_v60 }
 0x480   :  { %v233_v21 = vpop.permute.xlu2 %232 }
 0x481   :  { %236 = vst.msk [vmem:[#allocation2 + $0x8] sm:$0xff] %vm78_vm5, %v233_v21  ;;  %v301_v21 = vmul.f32 %v300_v18, %v286_v16 }
 0x488   :  { %v238_v35 = vld [vmem:[#allocation2 + $0x8] sm:$0xff] }
 0x489   :  { %v242_v36 = vrot.slane %v238_v35, 4 }
 0x48b   :  { %v246_v40 = vmax.f32 %v238_v35, %v242_v36 }
 0x48d   :  { %v255_v44 = vsel %vm247_vm10, %v246_v40, 0.0  ;;  %v274_v45 = vrot.slane %v246_v40, 2 }
 0x48e   :  { %v256_v48 = vrot.slane %v255_v44, 4 }
 0x48f   :  { %v278_v51 = vmax.f32 %v246_v40, %v274_v45 }
 0x490   :  { %v257_v54 = vadd.f32 %v256_v48, %v255_v44 }
 0x491   :  { %v287_v55 = vsel %vm279_vm11, %v278_v51, 0.0  ;;  %v306_v57 = vrot.slane %v278_v51, 1 }
 0x492   :  { %v258_v59 = vrot.slane %v257_v54, 2  ;;  %v288_v61 = vrot.slane %v287_v55, 4 }
 0x493   :  { %v310_v0 = vmax.f32 %v278_v51, %v306_v57 }
 0x494   :  { %v259_v1 = vadd.f32 %v258_v59, %v257_v54  ;;  %v289_v2 = vadd.f32 %v288_v61, %v287_v55 }
 0x495   :  { %v315_v4 = vrot.slane %v310_v0, 7 }
 0x496   :  { %v260_v6 = vrot.slane %v259_v1, 1  ;;  %v290_v8 = vrot.slane %v289_v2, 2 }
 0x497   :  { %v317_v11 = vsel %vm316_vm13, %v315_v4, %v309_v3 }
 0x498   :  { %v261_v12 = vadd.f32 %v260_v6, %v259_v1  ;;  %v291_v13 = vadd.f32 %v290_v8, %v289_v2 }
 0x49a   :  { %v270_v15 = vmul.f32 %v268_v9, %v261_v12  ;;  %v292_v17 = vrot.slane %v291_v13, 1 }
 0x49c   :  { %v327_v19 = vsel %vm316_vm13, %v270_v15, %v269_v14  ;;  %v293_v20 = vadd.f32 %v292_v17, %v291_v13 }
 0x49d   :  { %328 = vrot.lane.b32.xlu1 %v327_v19, %s476_s1 }
 0x49e   :  { %v302_v22 = vmul.f32 %v300_v18, %v293_v20 }
 0x4a0   :  { %v321_v23 = vsel %vm316_vm13, %v302_v22, %v301_v21 }
 0x4a1   :  { %322 = vrot.lane.b32.xlu0 %v321_v23, %s479_s29 }
 0x50f   :  { %v329_v28 = vpop.permute.xlu1 %328 }
 0x513   :  { %v323_v27 = vpop.permute.xlu0 %322 }
 0x514   :  { %v331_v29 = vsel %vm78_vm5, %v317_v11, %v323_v27 }
 0x515   :  { %v333_v30 = vsel %vm332_vm15, %v331_v29, %v329_v28 }
 0x516   :  { %416 = vmatmul.msk.f32.vlgmr.msra.gmra.mxu3 %vm350_vm0, %v333_v30 }
 0x599   :  { %v371_v32 = vpop.f32.mrf.mxu3 }
 0x59a   :  { %v372_v33 = vadd.f32 %v429_v31, %v371_v32 }
 0x59c   :  { %v417_v34 = vmul.f32 -1.442695, %v372_v33 }
 0x59e   :  { %446 = vpow2.f32 %v417_v34 }
 0x5a4   :  { %v447_v35 = vpop.eup %446 }
 0x5a5   :  { %v377_v36 = vadd.f32 1.0, %v447_v35 }
 0x5a7   :  { %448 = vrcp.f32 %v377_v36  ;;  %v389_v40 = vand.u32 2147483648, %v377_v36  ;;  %v387_v42 = vand.u32 2147483647, %v377_v36  ;;  %vm383_vm2 = vweird.f32 %v377_v36 }
 0x5a9   :  { %v390_v44 = vor.u32 1.1754944e-38, %v389_v40  ;;  %vm388_vm5 = vcmp.eq.f32.partialorder %v387_v42, 8.507059e+37 }
 0x5ad   :  { %v449_v37 = vpop.eup %448 }
 0x5ae   :  { %v379_v38 = vmul.f32 %v449_v37, %v377_v36  ;;  %vm384_vm1 = vweird.f32 %v449_v37 }
 0x5af   :  { %vm385_vm3 = vmor %vm383_vm2, %vm384_vm1 }
 0x5b0   :  { %v380_v39 = vsub.f32 1.0, %v379_v38 }
 0x5b2   :  { %v381_v41 = vmul.f32 %v449_v37, %v380_v39 }
 0x5b4   :  { %v382_v43 = vadd.f32 %v449_v37, %v381_v41 }
 0x5b6   :  { %v386_v45 = vsel %vm385_vm3, %v449_v37, %v382_v43 }
 0x5b7   :  { %v391_v46 = vsel %vm388_vm5, %v390_v44, %v386_v45 }
 0x5b8   :  { %394 = vst.msk [vmem:[#allocation3] sm:$0x3] %vm393_vm4, %v391_v46 }
 0x5b9   :  { %405 = dma.vmem_to_hbm [thread:$0]  %s401_s0, 32, %s403_s8, [#allocation4]  }
 0x5ba   :  { %474 = dma.done.wait [#allocation4], 32  }
 0x5bb   :  { %475 = vsyncadd [#allocation4], 4294967264 }
 0x5bc   :  { %410 = vsyncpa [#allocation4], 1 }

</bundles_post_ra>
